<compile_context>
chip_gen: v7x
topology: tpu7x:2x2x1
jax: 0.10.0
libtpu: 0.0.40
codegen_flags: <defaults>
</compile_context>

<pallas_src>
import functools
import math

import numpy as np
import jax
import jax.numpy as jnp
from jax import lax
from jax.experimental import pallas as pl
from jax.experimental.pallas import tpu as pltpu  # noqa: F401  (TPU backend)


def _convblock_kernel(x_ref, w0_ref, b0_ref,
                      w1_ref, b1_ref, m1_ref,
                      w2_ref, b2_ref, m2_ref,
                      w3_ref, b3_ref, m3_ref,
                      out_ref, *, row_w):
    """All refs are whole-array VMEM blocks (no grid).

    x_ref   : (Cin, NHW)     channel-major input, NHW = N*H*W on the lane axis
    wK_ref  : (d, k*k*CinK)  tap-major flattened weights ((kh*k+kw)*Cin + i)
    bK_ref  : (d, 1)
    mK_ref  : (k*k, NHW)     0/1 'same'-padding validity mask per tap
    out_ref : (4*d, NHW)     channel-major concat of the four conv outputs
    row_w   : static image width W (for flat-index shifts)
    """
    nhw = x_ref.shape[1]

    def shift_lanes(v, delta):
        # out[:, p] = v[:, p + delta]   (zero-filled at the array ends; row/batch
        # boundary crossings are zeroed by the precomputed masks).
        if delta == 0:
            return v
        z = jnp.zeros((v.shape[0], abs(delta)), v.dtype)
        if delta > 0:
            return jnp.concatenate([v[:, delta:], z], axis=1)
        return jnp.concatenate([z, v[:, :nhw + delta]], axis=1)

    def conv(x_cm, w_ref, b_ref, m_ref, k):
        # x_cm: (Cin, NHW) value -> returns (d, NHW).
        w = w_ref[...]
        b = b_ref[...]                              # (d, 1), lane-broadcasts
        if k == 1:
            patches = x_cm
        else:
            m = m_ref[...]                          # (k*k, NHW)
            pad = (k - 1) // 2                      # PyTorch 'same' left/top pad
            taps = []
            for kh in range(k):
                for kw in range(k):
                    t = kh * k + kw
                    delta = (kh - pad) * row_w + (kw - pad)
                    taps.append(shift_lanes(x_cm, delta) * m[t:t + 1, :])
            patches = jnp.concatenate(taps, axis=0)  # (k*k*Cin, NHW), im2col
        return jnp.dot(w, patches, preferred_element_type=jnp.float32) + b

    x_cm = x_ref[...]                               # (Cin, NHW)
    y0 = conv(x_cm, w0_ref, b0_ref, None, 1)        # one matmul per conv
    y1 = conv(y0, w1_ref, b1_ref, m1_ref, 2)
    y2 = conv(y1, w2_ref, b2_ref, m2_ref, 3)
    y3 = conv(y2, w3_ref, b3_ref, m3_ref, 4)
    # Single lane-dense store of the whole result.
    out_ref[...] = jnp.concatenate([y0, y1, y2, y3], axis=0)


def _tap_masks(n, h, w, k):
    """(k*k, n*h*w) float32 0/1 masks: tap (kh,kw) reads a valid (non-pad) pixel at flat p."""
    pad = (k - 1) // 2
    p = np.arange(n * h * w)
    hh = (p // w) % h
    ww = p % w
    m = np.zeros((k * k, n * h * w), np.float32)
    for kh in range(k):
        for kw in range(k):
            dh, dw = kh - pad, kw - pad
            ok = (hh + dh >= 0) & (hh + dh < h) & (ww + dw >= 0) & (ww + dw < w)
            m[kh * k + kw] = ok.astype(np.float32)
    return jnp.asarray(m)


@jax.jit
def conv_block_pallas(x_nchw, params):
    """params: tuple of (w_oihw, b) for kernel sizes (1, 2, 3, 4)."""
    n, cin, h, w = x_nchw.shape
    d = params[0][1].shape[0]

    # The module's chained forward feeds d-channel activations into convs 1..3,
    # which are declared with `idim` input channels -> requires idim == odim//4.
    for (wk, _), k in zip(params, (1, 2, 3, 4)):
        need_cin = cin if k == 1 else d
        assert wk.shape[1] == need_cin, (
            "ConvBlock chained forward requires idim == odim // 4 "
            f"(conv k={k} weight Cin={wk.shape[1]}, expected {need_cin})")

    nhw = n * h * w
    # NCHW -> channel-major (Cin, N*H*W); cheap wrapper-side reorder.
    x_cm = jnp.transpose(x_nchw, (1, 0, 2, 3)).reshape(cin, nhw).astype(jnp.float32)

    args = [x_cm]
    for (wk, bk), k in zip(params, (1, 2, 3, 4)):
        cout, cink = wk.shape[0], wk.shape[1]
        # OIHW -> (O, kh, kw, I) -> (Cout, k*k*Cin), tap-major (matches kernel im2col order).
        w_flat = jnp.transpose(wk, (0, 2, 3, 1)).reshape(cout, k * k * cink)
        args.append(w_flat.astype(jnp.float32))
        args.append(bk.reshape(cout, 1).astype(jnp.float32))
        if k > 1:
            args.append(_tap_masks(n, h, w, k))

    out_cm = pl.pallas_call(
        functools.partial(_convblock_kernel, row_w=w),
        out_shape=jax.ShapeDtypeStruct((4 * d, nhw), jnp.float32),
    )(*args)

    # channel-major (4d, N*H*W) -> NCHW (the reorder is a cheap XLA op outside the kernel).
    return jnp.transpose(out_cm.reshape(4 * d, n, h, w), (1, 0, 2, 3))


# ----------------------- pure-JAX reference (for verification) ----------------------
def _torch_conv_same_ref(x_nchw, w_oihw, b, k):
    lp = (k - 1) // 2
    rp = (k - 1) - lp
    y = lax.conv_general_dilated(
        x_nchw, w_oihw, window_strides=(1, 1),
        padding=((lp, rp), (lp, rp)),
        dimension_numbers=("NCHW", "OIHW", "NCHW"))
    return y + b.reshape(1, -1, 1, 1)


def conv_block_ref(x, params):
    (w0, b0), (w1, b1), (w2, b2), (w3, b3) = params
    x0 = _torch_conv_same_ref(x, w0, b0, 1)
    x1 = _torch_conv_same_ref(x0, w1, b1, 2)
    x2 = _torch_conv_same_ref(x1, w2, b2, 3)
    x3 = _torch_conv_same_ref(x2, w3, b3, 4)
    return jnp.concatenate([x0, x1, x2, x3], axis=1)


if __name__ == "__main__":
    # Small shapes consistent with the module (chained forward requires idim == odim // 4).
    N, idim, H, W = 2, 4, 8, 8      # N*H*W = 128 -> exactly one lane-dense vreg row
    odim = 16
    d = odim // 4
    assert idim == d

    key = jax.random.PRNGKey(0)
    keys = jax.random.split(key, 9)

    def init_conv(kw, kb, cin_, cout_, k):
        # Deterministic PyTorch-style uniform init bounds.
        fan_in = cin_ * k * k
        bound = 1.0 / math.sqrt(fan_in)
        wgt = jax.random.uniform(kw, (cout_, cin_, k, k), jnp.float32, -bound, bound)
        bias = jax.random.uniform(kb, (cout_,), jnp.float32, -bound, bound)
        return wgt, bias

    params = (
        init_conv(keys[0], keys[1], idim, d, 1),
        init_conv(keys[2], keys[3], idim, d, 2),
        init_conv(keys[4], keys[5], idim, d, 3),
        init_conv(keys[6], keys[7], idim, d, 4),
    )
    x = jax.random.normal(keys[8], (N, idim, H, W), jnp.float32)

    out = jax.block_until_ready(conv_block_pallas(x, params))
    ref = conv_block_ref(x, params)

    assert out.shape == (N, odim, H, W), out.shape
    max_err = float(jnp.max(jnp.abs(out - ref)))
    assert jnp.allclose(out, ref, atol=1e-4, rtol=1e-4), max_err

    print("KERNEL_OK")
</pallas_src>

<mosaic_0001>
module attributes {stable_mosaic.version = 11 : i64} {
  func.func @_convblock_kernel(%arg0: memref<4x128xf32, #tpu.memory_space<vmem>>, %arg1: memref<4x4xf32, #tpu.memory_space<vmem>>, %arg2: memref<4x1xf32, #tpu.memory_space<vmem>>, %arg3: memref<4x16xf32, #tpu.memory_space<vmem>>, %arg4: memref<4x1xf32, #tpu.memory_space<vmem>>, %arg5: memref<4x128xf32, #tpu.memory_space<vmem>>, %arg6: memref<4x36xf32, #tpu.memory_space<vmem>>, %arg7: memref<4x1xf32, #tpu.memory_space<vmem>>, %arg8: memref<9x128xf32, #tpu.memory_space<vmem>>, %arg9: memref<4x64xf32, #tpu.memory_space<vmem>>, %arg10: memref<4x1xf32, #tpu.memory_space<vmem>>, %arg11: memref<16x128xf32, #tpu.memory_space<vmem>>, %arg12: memref<16x128xf32, #tpu.memory_space<vmem>>) attributes {dimension_semantics = [], scalar_prefetch = 0 : i64, scratch_operands = 0 : i64, tpu.core_type = #tpu.core_type<tc>} {
    %c0 = arith.constant 0 : index
    %c0_0 = arith.constant 0 : index
    %0 = vector.load %arg0[%c0, %c0_0] : memref<4x128xf32, #tpu.memory_space<vmem>>, vector<4x128xf32>
    %c0_1 = arith.constant 0 : index
    %c0_2 = arith.constant 0 : index
    %1 = vector.load %arg1[%c0_1, %c0_2] : memref<4x4xf32, #tpu.memory_space<vmem>>, vector<4x4xf32>
    %c0_3 = arith.constant 0 : index
    %c0_4 = arith.constant 0 : index
    %2 = vector.load %arg2[%c0_3, %c0_4] : memref<4x1xf32, #tpu.memory_space<vmem>>, vector<4x1xf32>
    %cst = arith.constant dense<0.000000e+00> : vector<4x128xf32>
    %3 = tpu.matmul %1, %0, %cst {dimension_numbers = #tpu.dot_dimension_numbers<[1], [0], [0], [1], [0, 0, 1, 1], [], []>} : vector<4x4xf32>, vector<4x128xf32>, vector<4x128xf32> -> vector<4x128xf32>
    %4 = vector.broadcast %2 : vector<4x1xf32> to vector<4x128xf32>
    %5 = arith.addf %3, %4 : vector<4x128xf32>
    %c0_5 = arith.constant 0 : index
    %c0_6 = arith.constant 0 : index
    %6 = vector.load %arg3[%c0_5, %c0_6] : memref<4x16xf32, #tpu.memory_space<vmem>>, vector<4x16xf32>
    %c0_7 = arith.constant 0 : index
    %c0_8 = arith.constant 0 : index
    %7 = vector.load %arg4[%c0_7, %c0_8] : memref<4x1xf32, #tpu.memory_space<vmem>>, vector<4x1xf32>
    %c0_9 = arith.constant 0 : index
    %c0_10 = arith.constant 0 : index
    %8 = vector.load %arg5[%c0_9, %c0_10] : memref<4x128xf32, #tpu.memory_space<vmem>>, vector<4x128xf32>
    %9 = vector.extract_strided_slice %8 {offsets = [0, 0], sizes = [1, 128], strides = [1, 1]} : vector<4x128xf32> to vector<1x128xf32>
    %10 = vector.broadcast %9 : vector<1x128xf32> to vector<4x128xf32>
    %11 = arith.mulf %5, %10 : vector<4x128xf32>
    %cst_11 = arith.constant 0.000000e+00 : f32
    %12 = vector.broadcast %cst_11 : f32 to vector<4x1xf32>
    %13 = vector.extract_strided_slice %5 {offsets = [0, 1], sizes = [4, 127], strides = [1, 1]} : vector<4x128xf32> to vector<4x127xf32>
    %14 = tpu.concatenate %13, %12 in 1 : vector<4x127xf32>, vector<4x1xf32> -> vector<4x128xf32>
    %15 = vector.extract_strided_slice %8 {offsets = [1, 0], sizes = [1, 128], strides = [1, 1]} : vector<4x128xf32> to vector<1x128xf32>
    %16 = vector.broadcast %15 : vector<1x128xf32> to vector<4x128xf32>
    %17 = arith.mulf %14, %16 : vector<4x128xf32>
    %cst_12 = arith.constant 0.000000e+00 : f32
    %18 = vector.broadcast %cst_12 : f32 to vector<4x8xf32>
    %19 = vector.extract_strided_slice %5 {offsets = [0, 8], sizes = [4, 120], strides = [1, 1]} : vector<4x128xf32> to vector<4x120xf32>
    %20 = tpu.concatenate %19, %18 in 1 : vector<4x120xf32>, vector<4x8xf32> -> vector<4x128xf32>
    %21 = vector.extract_strided_slice %8 {offsets = [2, 0], sizes = [1, 128], strides = [1, 1]} : vector<4x128xf32> to vector<1x128xf32>
    %22 = vector.broadcast %21 : vector<1x128xf32> to vector<4x128xf32>
    %23 = arith.mulf %20, %22 : vector<4x128xf32>
    %cst_13 = arith.constant 0.000000e+00 : f32
    %24 = vector.broadcast %cst_13 : f32 to vector<4x9xf32>
    %25 = vector.extract_strided_slice %5 {offsets = [0, 9], sizes = [4, 119], strides = [1, 1]} : vector<4x128xf32> to vector<4x119xf32>
    %26 = tpu.concatenate %25, %24 in 1 : vector<4x119xf32>, vector<4x9xf32> -> vector<4x128xf32>
    %27 = vector.extract_strided_slice %8 {offsets = [3, 0], sizes = [1, 128], strides = [1, 1]} : vector<4x128xf32> to vector<1x128xf32>
    %28 = vector.broadcast %27 : vector<1x128xf32> to vector<4x128xf32>
    %29 = arith.mulf %26, %28 : vector<4x128xf32>
    %30 = tpu.concatenate %11, %17, %23, %29 in 0 : vector<4x128xf32>, vector<4x128xf32>, vector<4x128xf32>, vector<4x128xf32> -> vector<16x128xf32>
    %cst_14 = arith.constant dense<0.000000e+00> : vector<4x128xf32>
    %31 = tpu.matmul %6, %30, %cst_14 {dimension_numbers = #tpu.dot_dimension_numbers<[1], [0], [0], [1], [0, 0, 1, 1], [], []>} : vector<4x16xf32>, vector<16x128xf32>, vector<4x128xf32> -> vector<4x128xf32>
    %32 = vector.broadcast %7 : vector<4x1xf32> to vector<4x128xf32>
    %33 = arith.addf %31, %32 : vector<4x128xf32>
    %c0_15 = arith.constant 0 : index
    %c0_16 = arith.constant 0 : index
    %34 = vector.load %arg6[%c0_15, %c0_16] : memref<4x36xf32, #tpu.memory_space<vmem>>, vector<4x36xf32>
    %c0_17 = arith.constant 0 : index
    %c0_18 = arith.constant 0 : index
    %35 = vector.load %arg7[%c0_17, %c0_18] : memref<4x1xf32, #tpu.memory_space<vmem>>, vector<4x1xf32>
    %c0_19 = arith.constant 0 : index
    %c0_20 = arith.constant 0 : index
    %36 = vector.load %arg8[%c0_19, %c0_20] : memref<9x128xf32, #tpu.memory_space<vmem>>, vector<9x128xf32>
    %cst_21 = arith.constant 0.000000e+00 : f32
    %37 = vector.broadcast %cst_21 : f32 to vector<4x9xf32>
    %38 = vector.extract_strided_slice %33 {offsets = [0, 0], sizes = [4, 119], strides = [1, 1]} : vector<4x128xf32> to vector<4x119xf32>
    %39 = tpu.concatenate %37, %38 in 1 : vector<4x9xf32>, vector<4x119xf32> -> vector<4x128xf32>
    %40 = vector.extract_strided_slice %36 {offsets = [0, 0], sizes = [1, 128], strides = [1, 1]} : vector<9x128xf32> to vector<1x128xf32>
    %41 = vector.broadcast %40 : vector<1x128xf32> to vector<4x128xf32>
    %42 = arith.mulf %39, %41 : vector<4x128xf32>
    %cst_22 = arith.constant 0.000000e+00 : f32
    %43 = vector.broadcast %cst_22 : f32 to vector<4x8xf32>
    %44 = vector.extract_strided_slice %33 {offsets = [0, 0], sizes = [4, 120], strides = [1, 1]} : vector<4x128xf32> to vector<4x120xf32>
    %45 = tpu.concatenate %43, %44 in 1 : vector<4x8xf32>, vector<4x120xf32> -> vector<4x128xf32>
    %46 = vector.extract_strided_slice %36 {offsets = [1, 0], sizes = [1, 128], strides = [1, 1]} : vector<9x128xf32> to vector<1x128xf32>
    %47 = vector.broadcast %46 : vector<1x128xf32> to vector<4x128xf32>
    %48 = arith.mulf %45, %47 : vector<4x128xf32>
    %cst_23 = arith.constant 0.000000e+00 : f32
    %49 = vector.broadcast %cst_23 : f32 to vector<4x7xf32>
    %50 = vector.extract_strided_slice %33 {offsets = [0, 0], sizes = [4, 121], strides = [1, 1]} : vector<4x128xf32> to vector<4x121xf32>
    %51 = tpu.concatenate %49, %50 in 1 : vector<4x7xf32>, vector<4x121xf32> -> vector<4x128xf32>
    %52 = vector.extract_strided_slice %36 {offsets = [2, 0], sizes = [1, 128], strides = [1, 1]} : vector<9x128xf32> to vector<1x128xf32>
    %53 = vector.broadcast %52 : vector<1x128xf32> to vector<4x128xf32>
    %54 = arith.mulf %51, %53 : vector<4x128xf32>
    %cst_24 = arith.constant 0.000000e+00 : f32
    %55 = vector.broadcast %cst_24 : f32 to vector<4x1xf32>
    %56 = vector.extract_strided_slice %33 {offsets = [0, 0], sizes = [4, 127], strides = [1, 1]} : vector<4x128xf32> to vector<4x127xf32>
    %57 = tpu.concatenate %55, %56 in 1 : vector<4x1xf32>, vector<4x127xf32> -> vector<4x128xf32>
    %58 = vector.extract_strided_slice %36 {offsets = [3, 0], sizes = [1, 128], strides = [1, 1]} : vector<9x128xf32> to vector<1x128xf32>
    %59 = vector.broadcast %58 : vector<1x128xf32> to vector<4x128xf32>
    %60 = arith.mulf %57, %59 : vector<4x128xf32>
    %61 = vector.extract_strided_slice %36 {offsets = [4, 0], sizes = [1, 128], strides = [1, 1]} : vector<9x128xf32> to vector<1x128xf32>
    %62 = vector.broadcast %61 : vector<1x128xf32> to vector<4x128xf32>
    %63 = arith.mulf %33, %62 : vector<4x128xf32>
    %cst_25 = arith.constant 0.000000e+00 : f32
    %64 = vector.broadcast %cst_25 : f32 to vector<4x1xf32>
    %65 = vector.extract_strided_slice %33 {offsets = [0, 1], sizes = [4, 127], strides = [1, 1]} : vector<4x128xf32> to vector<4x127xf32>
    %66 = tpu.concatenate %65, %64 in 1 : vector<4x127xf32>, vector<4x1xf32> -> vector<4x128xf32>
    %67 = vector.extract_strided_slice %36 {offsets = [5, 0], sizes = [1, 128], strides = [1, 1]} : vector<9x128xf32> to vector<1x128xf32>
    %68 = vector.broadcast %67 : vector<1x128xf32> to vector<4x128xf32>
    %69 = arith.mulf %66, %68 : vector<4x128xf32>
    %cst_26 = arith.constant 0.000000e+00 : f32
    %70 = vector.broadcast %cst_26 : f32 to vector<4x7xf32>
    %71 = vector.extract_strided_slice %33 {offsets = [0, 7], sizes = [4, 121], strides = [1, 1]} : vector<4x128xf32> to vector<4x121xf32>
    %72 = tpu.concatenate %71, %70 in 1 : vector<4x121xf32>, vector<4x7xf32> -> vector<4x128xf32>
    %73 = vector.extract_strided_slice %36 {offsets = [6, 0], sizes = [1, 128], strides = [1, 1]} : vector<9x128xf32> to vector<1x128xf32>
    %74 = vector.broadcast %73 : vector<1x128xf32> to vector<4x128xf32>
    %75 = arith.mulf %72, %74 : vector<4x128xf32>
    %cst_27 = arith.constant 0.000000e+00 : f32
    %76 = vector.broadcast %cst_27 : f32 to vector<4x8xf32>
    %77 = vector.extract_strided_slice %33 {offsets = [0, 8], sizes = [4, 120], strides = [1, 1]} : vector<4x128xf32> to vector<4x120xf32>
    %78 = tpu.concatenate %77, %76 in 1 : vector<4x120xf32>, vector<4x8xf32> -> vector<4x128xf32>
    %79 = vector.extract_strided_slice %36 {offsets = [7, 0], sizes = [1, 128], strides = [1, 1]} : vector<9x128xf32> to vector<1x128xf32>
    %80 = vector.broadcast %79 : vector<1x128xf32> to vector<4x128xf32>
    %81 = arith.mulf %78, %80 : vector<4x128xf32>
    %cst_28 = arith.constant 0.000000e+00 : f32
    %82 = vector.broadcast %cst_28 : f32 to vector<4x9xf32>
    %83 = vector.extract_strided_slice %33 {offsets = [0, 9], sizes = [4, 119], strides = [1, 1]} : vector<4x128xf32> to vector<4x119xf32>
    %84 = tpu.concatenate %83, %82 in 1 : vector<4x119xf32>, vector<4x9xf32> -> vector<4x128xf32>
    %85 = vector.extract_strided_slice %36 {offsets = [8, 0], sizes = [1, 128], strides = [1, 1]} : vector<9x128xf32> to vector<1x128xf32>
    %86 = vector.broadcast %85 : vector<1x128xf32> to vector<4x128xf32>
    %87 = arith.mulf %84, %86 : vector<4x128xf32>
    %88 = tpu.concatenate %42, %48, %54, %60, %63, %69, %75, %81, %87 in 0 : vector<4x128xf32>, vector<4x128xf32>, vector<4x128xf32>, vector<4x128xf32>, vector<4x128xf32>, vector<4x128xf32>, vector<4x128xf32>, vector<4x128xf32>, vector<4x128xf32> -> vector<36x128xf32>
    %cst_29 = arith.constant dense<0.000000e+00> : vector<4x128xf32>
    %89 = tpu.matmul %34, %88, %cst_29 {dimension_numbers = #tpu.dot_dimension_numbers<[1], [0], [0], [1], [0, 0, 1, 1], [], []>} : vector<4x36xf32>, vector<36x128xf32>, vector<4x128xf32> -> vector<4x128xf32>
    %90 = vector.broadcast %35 : vector<4x1xf32> to vector<4x128xf32>
    %91 = arith.addf %89, %90 : vector<4x128xf32>
    %c0_30 = arith.constant 0 : index
    %c0_31 = arith.constant 0 : index
    %92 = vector.load %arg9[%c0_30, %c0_31] : memref<4x64xf32, #tpu.memory_space<vmem>>, vector<4x64xf32>
    %c0_32 = arith.constant 0 : index
    %c0_33 = arith.constant 0 : index
    %93 = vector.load %arg10[%c0_32, %c0_33] : memref<4x1xf32, #tpu.memory_space<vmem>>, vector<4x1xf32>
    %c0_34 = arith.constant 0 : index
    %c0_35 = arith.constant 0 : index
    %94 = vector.load %arg11[%c0_34, %c0_35] : memref<16x128xf32, #tpu.memory_space<vmem>>, vector<16x128xf32>
    %cst_36 = arith.constant 0.000000e+00 : f32
    %95 = vector.broadcast %cst_36 : f32 to vector<4x9xf32>
    %96 = vector.extract_strided_slice %91 {offsets = [0, 0], sizes = [4, 119], strides = [1, 1]} : vector<4x128xf32> to vector<4x119xf32>
    %97 = tpu.concatenate %95, %96 in 1 : vector<4x9xf32>, vector<4x119xf32> -> vector<4x128xf32>
    %98 = vector.extract_strided_slice %94 {offsets = [0, 0], sizes = [1, 128], strides = [1, 1]} : vector<16x128xf32> to vector<1x128xf32>
    %99 = vector.broadcast %98 : vector<1x128xf32> to vector<4x128xf32>
    %100 = arith.mulf %97, %99 : vector<4x128xf32>
    %cst_37 = arith.constant 0.000000e+00 : f32
    %101 = vector.broadcast %cst_37 : f32 to vector<4x8xf32>
    %102 = vector.extract_strided_slice %91 {offsets = [0, 0], sizes = [4, 120], strides = [1, 1]} : vector<4x128xf32> to vector<4x120xf32>
    %103 = tpu.concatenate %101, %102 in 1 : vector<4x8xf32>, vector<4x120xf32> -> vector<4x128xf32>
    %104 = vector.extract_strided_slice %94 {offsets = [1, 0], sizes = [1, 128], strides = [1, 1]} : vector<16x128xf32> to vector<1x128xf32>
    %105 = vector.broadcast %104 : vector<1x128xf32> to vector<4x128xf32>
    %106 = arith.mulf %103, %105 : vector<4x128xf32>
    %cst_38 = arith.constant 0.000000e+00 : f32
    %107 = vector.broadcast %cst_38 : f32 to vector<4x7xf32>
    %108 = vector.extract_strided_slice %91 {offsets = [0, 0], sizes = [4, 121], strides = [1, 1]} : vector<4x128xf32> to vector<4x121xf32>
    %109 = tpu.concatenate %107, %108 in 1 : vector<4x7xf32>, vector<4x121xf32> -> vector<4x128xf32>
    %110 = vector.extract_strided_slice %94 {offsets = [2, 0], sizes = [1, 128], strides = [1, 1]} : vector<16x128xf32> to vector<1x128xf32>
    %111 = vector.broadcast %110 : vector<1x128xf32> to vector<4x128xf32>
    %112 = arith.mulf %109, %111 : vector<4x128xf32>
    %cst_39 = arith.constant 0.000000e+00 : f32
    %113 = vector.broadcast %cst_39 : f32 to vector<4x6xf32>
    %114 = vector.extract_strided_slice %91 {offsets = [0, 0], sizes = [4, 122], strides = [1, 1]} : vector<4x128xf32> to vector<4x122xf32>
    %115 = tpu.concatenate %113, %114 in 1 : vector<4x6xf32>, vector<4x122xf32> -> vector<4x128xf32>
    %116 = vector.extract_strided_slice %94 {offsets = [3, 0], sizes = [1, 128], strides = [1, 1]} : vector<16x128xf32> to vector<1x128xf32>
    %117 = vector.broadcast %116 : vector<1x128xf32> to vector<4x128xf32>
    %118 = arith.mulf %115, %117 : vector<4x128xf32>
    %cst_40 = arith.constant 0.000000e+00 : f32
    %119 = vector.broadcast %cst_40 : f32 to vector<4x1xf32>
    %120 = vector.extract_strided_slice %91 {offsets = [0, 0], sizes = [4, 127], strides = [1, 1]} : vector<4x128xf32> to vector<4x127xf32>
    %121 = tpu.concatenate %119, %120 in 1 : vector<4x1xf32>, vector<4x127xf32> -> vector<4x128xf32>
    %122 = vector.extract_strided_slice %94 {offsets = [4, 0], sizes = [1, 128], strides = [1, 1]} : vector<16x128xf32> to vector<1x128xf32>
    %123 = vector.broadcast %122 : vector<1x128xf32> to vector<4x128xf32>
    %124 = arith.mulf %121, %123 : vector<4x128xf32>
    %125 = vector.extract_strided_slice %94 {offsets = [5, 0], sizes = [1, 128], strides = [1, 1]} : vector<16x128xf32> to vector<1x128xf32>
    %126 = vector.broadcast %125 : vector<1x128xf32> to vector<4x128xf32>
    %127 = arith.mulf %91, %126 : vector<4x128xf32>
    %cst_41 = arith.constant 0.000000e+00 : f32
    %128 = vector.broadcast %cst_41 : f32 to vector<4x1xf32>
    %129 = vector.extract_strided_slice %91 {offsets = [0, 1], sizes = [4, 127], strides = [1, 1]} : vector<4x128xf32> to vector<4x127xf32>
    %130 = tpu.concatenate %129, %128 in 1 : vector<4x127xf32>, vector<4x1xf32> -> vector<4x128xf32>
    %131 = vector.extract_strided_slice %94 {offsets = [6, 0], sizes = [1, 128], strides = [1, 1]} : vector<16x128xf32> to vector<1x128xf32>
    %132 = vector.broadcast %131 : vector<1x128xf32> to vector<4x128xf32>
    %133 = arith.mulf %130, %132 : vector<4x128xf32>
    %cst_42 = arith.constant 0.000000e+00 : f32
    %134 = vector.broadcast %cst_42 : f32 to vector<4x2xf32>
    %135 = vector.extract_strided_slice %91 {offsets = [0, 2], sizes = [4, 126], strides = [1, 1]} : vector<4x128xf32> to vector<4x126xf32>
    %136 = tpu.concatenate %135, %134 in 1 : vector<4x126xf32>, vector<4x2xf32> -> vector<4x128xf32>
    %137 = vector.extract_strided_slice %94 {offsets = [7, 0], sizes = [1, 128], strides = [1, 1]} : vector<16x128xf32> to vector<1x128xf32>
    %138 = vector.broadcast %137 : vector<1x128xf32> to vector<4x128xf32>
    %139 = arith.mulf %136, %138 : vector<4x128xf32>
    %cst_43 = arith.constant 0.000000e+00 : f32
    %140 = vector.broadcast %cst_43 : f32 to vector<4x7xf32>
    %141 = vector.extract_strided_slice %91 {offsets = [0, 7], sizes = [4, 121], strides = [1, 1]} : vector<4x128xf32> to vector<4x121xf32>
    %142 = tpu.concatenate %141, %140 in 1 : vector<4x121xf32>, vector<4x7xf32> -> vector<4x128xf32>
    %143 = vector.extract_strided_slice %94 {offsets = [8, 0], sizes = [1, 128], strides = [1, 1]} : vector<16x128xf32> to vector<1x128xf32>
    %144 = vector.broadcast %143 : vector<1x128xf32> to vector<4x128xf32>
    %145 = arith.mulf %142, %144 : vector<4x128xf32>
    %cst_44 = arith.constant 0.000000e+00 : f32
    %146 = vector.broadcast %cst_44 : f32 to vector<4x8xf32>
    %147 = vector.extract_strided_slice %91 {offsets = [0, 8], sizes = [4, 120], strides = [1, 1]} : vector<4x128xf32> to vector<4x120xf32>
    %148 = tpu.concatenate %147, %146 in 1 : vector<4x120xf32>, vector<4x8xf32> -> vector<4x128xf32>
    %149 = vector.extract_strided_slice %94 {offsets = [9, 0], sizes = [1, 128], strides = [1, 1]} : vector<16x128xf32> to vector<1x128xf32>
    %150 = vector.broadcast %149 : vector<1x128xf32> to vector<4x128xf32>
    %151 = arith.mulf %148, %150 : vector<4x128xf32>
    %cst_45 = arith.constant 0.000000e+00 : f32
    %152 = vector.broadcast %cst_45 : f32 to vector<4x9xf32>
    %153 = vector.extract_strided_slice %91 {offsets = [0, 9], sizes = [4, 119], strides = [1, 1]} : vector<4x128xf32> to vector<4x119xf32>
    %154 = tpu.concatenate %153, %152 in 1 : vector<4x119xf32>, vector<4x9xf32> -> vector<4x128xf32>
    %155 = vector.extract_strided_slice %94 {offsets = [10, 0], sizes = [1, 128], strides = [1, 1]} : vector<16x128xf32> to vector<1x128xf32>
    %156 = vector.broadcast %155 : vector<1x128xf32> to vector<4x128xf32>
    %157 = arith.mulf %154, %156 : vector<4x128xf32>
    %cst_46 = arith.constant 0.000000e+00 : f32
    %158 = vector.broadcast %cst_46 : f32 to vector<4x10xf32>
    %159 = vector.extract_strided_slice %91 {offsets = [0, 10], sizes = [4, 118], strides = [1, 1]} : vector<4x128xf32> to vector<4x118xf32>
    %160 = tpu.concatenate %159, %158 in 1 : vector<4x118xf32>, vector<4x10xf32> -> vector<4x128xf32>
    %161 = vector.extract_strided_slice %94 {offsets = [11, 0], sizes = [1, 128], strides = [1, 1]} : vector<16x128xf32> to vector<1x128xf32>
    %162 = vector.broadcast %161 : vector<1x128xf32> to vector<4x128xf32>
    %163 = arith.mulf %160, %162 : vector<4x128xf32>
    %cst_47 = arith.constant 0.000000e+00 : f32
    %164 = vector.broadcast %cst_47 : f32 to vector<4x15xf32>
    %165 = vector.extract_strided_slice %91 {offsets = [0, 15], sizes = [4, 113], strides = [1, 1]} : vector<4x128xf32> to vector<4x113xf32>
    %166 = tpu.concatenate %165, %164 in 1 : vector<4x113xf32>, vector<4x15xf32> -> vector<4x128xf32>
    %167 = vector.extract_strided_slice %94 {offsets = [12, 0], sizes = [1, 128], strides = [1, 1]} : vector<16x128xf32> to vector<1x128xf32>
    %168 = vector.broadcast %167 : vector<1x128xf32> to vector<4x128xf32>
    %169 = arith.mulf %166, %168 : vector<4x128xf32>
    %cst_48 = arith.constant 0.000000e+00 : f32
    %170 = vector.broadcast %cst_48 : f32 to vector<4x16xf32>
    %171 = vector.extract_strided_slice %91 {offsets = [0, 16], sizes = [4, 112], strides = [1, 1]} : vector<4x128xf32> to vector<4x112xf32>
    %172 = tpu.concatenate %171, %170 in 1 : vector<4x112xf32>, vector<4x16xf32> -> vector<4x128xf32>
    %173 = vector.extract_strided_slice %94 {offsets = [13, 0], sizes = [1, 128], strides = [1, 1]} : vector<16x128xf32> to vector<1x128xf32>
    %174 = vector.broadcast %173 : vector<1x128xf32> to vector<4x128xf32>
    %175 = arith.mulf %172, %174 : vector<4x128xf32>
    %cst_49 = arith.constant 0.000000e+00 : f32
    %176 = vector.broadcast %cst_49 : f32 to vector<4x17xf32>
    %177 = vector.extract_strided_slice %91 {offsets = [0, 17], sizes = [4, 111], strides = [1, 1]} : vector<4x128xf32> to vector<4x111xf32>
    %178 = tpu.concatenate %177, %176 in 1 : vector<4x111xf32>, vector<4x17xf32> -> vector<4x128xf32>
    %179 = vector.extract_strided_slice %94 {offsets = [14, 0], sizes = [1, 128], strides = [1, 1]} : vector<16x128xf32> to vector<1x128xf32>
    %180 = vector.broadcast %179 : vector<1x128xf32> to vector<4x128xf32>
    %181 = arith.mulf %178, %180 : vector<4x128xf32>
    %cst_50 = arith.constant 0.000000e+00 : f32
    %182 = vector.broadcast %cst_50 : f32 to vector<4x18xf32>
    %183 = vector.extract_strided_slice %91 {offsets = [0, 18], sizes = [4, 110], strides = [1, 1]} : vector<4x128xf32> to vector<4x110xf32>
    %184 = tpu.concatenate %183, %182 in 1 : vector<4x110xf32>, vector<4x18xf32> -> vector<4x128xf32>
    %185 = vector.extract_strided_slice %94 {offsets = [15, 0], sizes = [1, 128], strides = [1, 1]} : vector<16x128xf32> to vector<1x128xf32>
    %186 = vector.broadcast %185 : vector<1x128xf32> to vector<4x128xf32>
    %187 = arith.mulf %184, %186 : vector<4x128xf32>
    %188 = tpu.concatenate %100, %106, %112, %118, %124, %127, %133, %139, %145, %151, %157, %163, %169, %175, %181, %187 in 0 : vector<4x128xf32>, vector<4x128xf32>, vector<4x128xf32>, vector<4x128xf32>, vector<4x128xf32>, vector<4x128xf32>, vector<4x128xf32>, vector<4x128xf32>, vector<4x128xf32>, vector<4x128xf32>, vector<4x128xf32>, vector<4x128xf32>, vector<4x128xf32>, vector<4x128xf32>, vector<4x128xf32>, vector<4x128xf32> -> vector<64x128xf32>
    %cst_51 = arith.constant dense<0.000000e+00> : vector<4x128xf32>
    %189 = tpu.matmul %92, %188, %cst_51 {dimension_numbers = #tpu.dot_dimension_numbers<[1], [0], [0], [1], [0, 0, 1, 1], [], []>} : vector<4x64xf32>, vector<64x128xf32>, vector<4x128xf32> -> vector<4x128xf32>
    %190 = vector.broadcast %93 : vector<4x1xf32> to vector<4x128xf32>
    %191 = arith.addf %189, %190 : vector<4x128xf32>
    %192 = tpu.concatenate %5, %33, %91, %191 in 0 : vector<4x128xf32>, vector<4x128xf32>, vector<4x128xf32>, vector<4x128xf32> -> vector<16x128xf32>
    %c0_52 = arith.constant 0 : index
    %c0_53 = arith.constant 0 : index
    %193 = vector.load %arg12[%c0_52, %c0_53] : memref<16x128xf32, #tpu.memory_space<vmem>>, vector<16x128xf32>
    tpu.vector_store %arg12[%c0_52, %c0_53], %192 {strides = array<i32>} : memref<16x128xf32, #tpu.memory_space<vmem>>, vector<16x128xf32>,
    return
  }
}

</mosaic_0001>

<bundles_post_ra>
// kernel: conv_block_pallas.1
= control target key start
LH: loop header
LB: loop body
LE: loop exit
PB: predicated region body
PF: predicated region fallthrough
CT: control target
= control target key end

     0   :  { %vm53_vm0 = vcmask 1043456   ;;  %vm49_vm1 = vcmask 31744   ;;  %v827_v0 = vmov 0.0   ;;  %vm828_vm2 = vmmov 0   ;;  %s833_s28 = smov 120   ;;  %s834_s13 = smov 1   ;;  %s1117_s0 = inlined_call_operand.vmem [shape: f32[4,128], index: 0, kind: input, shape index: {}]   ;;  %s1118_s1 = inlined_call_operand.vmem [shape: f32[4,4], index: 1, kind: input, shape index: {}]   ;;  %s1119_s2 = inlined_call_operand.vmem [shape: f32[4,1], index: 2, kind: input, shape index: {}]   ;;  %s1120_s4 = inlined_call_operand.vmem [shape: f32[4,1], index: 4, kind: input, shape index: {}]   ;;  %s1121_s5 = inlined_call_operand.vmem [shape: f32[4,128], index: 5, kind: input, shape index: {}]   ;;  %s1122_s3 = inlined_call_operand.vmem [shape: f32[4,16], index: 3, kind: input, shape index: {}]   ;;  %s1123_s12 = inlined_call_operand.vmem [shape: f32[16,128], index: 12, kind: output, shape index: {}]   ;;  %s1124_s7 = inlined_call_operand.vmem [shape: f32[4,1], index: 7, kind: input, shape index: {}]   ;;  %s1125_s8 = inlined_call_operand.vmem [shape: f32[9,128], index: 8, kind: input, shape index: {}]   ;;  %s1126_s6 = inlined_call_operand.vmem [shape: f32[4,36], index: 6, kind: input, shape index: {}]   ;;  %s1127_s10 = inlined_call_operand.vmem [shape: f32[4,1], index: 10, kind: input, shape index: {}]   ;;  %s1128_s11 = inlined_call_operand.vmem [shape: f32[16,128], index: 11, kind: input, shape index: {}]   ;;  %s1129_s9 = inlined_call_operand.vmem [shape: f32[4,64], index: 9, kind: input, shape index: {}]  }
   0x1   :  { %741 = vmatprep.subr.mxu0 %v827_v0  ;;  %v41_v1 = vld [vmem:[%s1117_s0] sm:$0xf]  ;;  %743 = vmatprep.mubr.msk.f32.mxu0 %vm828_vm2, %v827_v0  ;;  %v829_v3 = vmov 0   ;;  %v830_v6 = vmov 0.0|0.0   ;;  %s831_s0 = smov 119   ;;  %v130_v11 = vlaneseq  ;;  %vm159_vm3 = vcmask 973824  }
   0x2   :  { %v42_v2 = vld [vmem:[%s1118_s1] sm:$0xf]  ;;  %742 = vmatpush3.msk.msra.mxu0 %vm53_vm0, %v41_v1  ;;  %825 = vset.pattern.permute.xlu0 %v829_v3  ;;  %s832_s1 = smov 127   ;;  %vm139_vm4 = vcmask 1039360   ;;  %vm149_vm5 = vcmask 982016   ;;  %vm179_vm6 = vcmask 130048  }
   0x3   :  { %v43_v4 = vld [vmem:[%s1119_s2] sm:$0xf]  ;;  %744 = vmatmul.mubr.msk.f32.vlgmr.msra.gmra.mrb[0].mxu0 %vm49_vm1, %v42_v2  ;;  %826 = vset.pattern.permute.xlu1 %v829_v3  ;;  %v936_v12 = vshrl.u32 %v130_v11, 7  ;;  %s835_s14 = smov 8   ;;  %s836_s16 = smov 7   ;;  %vm291_vm7 = vcmask 7168  }
   0x4   :  { %46 = vperm.xlu0 %825, %v43_v4   ;;  %750 = vmatprep.mubr.msk.f32.mxu0 %vm828_vm2, %v827_v0  ;;  %v128_v10 = vld [vmem:[%s1120_s4] sm:$0xf]  ;;  %s837_s17 = smov 9   ;;  %s838_s18 = smov 121   ;;  %vm271_vm8 = vcmask 64512   ;;  %vm281_vm9 = vcmask 56320  }
   0x5   :  { %782 = vmatprep.mubr.msk.f32.mxu1 %vm828_vm2, %v827_v0  ;;  %785 = vmatprep.subr.bf16.mxu0 %v830_v6  ;;  %v939_v13 = vsub.s32 3, %v936_v12  ;;  %v942_v14 = vsub.s32 1, %v936_v12  ;;  %v129_v15 = vld [vmem:[%s1121_s5] sm:$0xf]  ;;  %v948_v16 = vsub.s32 0, %v936_v12  ;;  %v953_v19 = vsub.s32 2, %v936_v12 }
   0x6   :  { %794 = vmatprep.subr.bf16.mxu1 %v830_v6  ;;  %v127_v37 = vld [vmem:[%s1122_s3] sm:$0xf]  ;;  %v1000_v50 = vsub.s32 7, %v936_v12  ;;  %v1006_v54 = vsub.s32 5, %v936_v12  ;;  %vm261_vm10 = vcmask 72704   ;;  %v1011_v61 = vsub.s32 4, %v936_v12 }
   0x7   :  { %v164_v17 = vrot.slane %v129_v15, %v939_v13  ;;  %v144_v18 = vrot.slane %v129_v15, %v942_v14  ;;  %v133_v22 = vrot.slane %v129_v15, %v948_v16  ;;  %v154_v27 = vrot.slane %v129_v15, %v953_v19  ;;  %v254_v44 = vld [vmem:[%s1124_s7] sm:$0xf]  ;;  %s841_s26 = smov 118   ;;  %s842_s2 = smov 112  }
   0x8   :  { %v255_v45 = vld [vmem:[%s1125_s8] sm:$0xff]  ;;  %v1017_v2 = vsub.s32 6, %v936_v12  ;;  %vm315_vm11 = vcmask 990208   ;;  %vm361_vm12 = vcmask 293888   ;;  %s843_s27 = smov 113   ;;  %s844_s29 = smov 110  }
   0x9   :  { %v296_v46 = vrot.slane %v255_v45, %v939_v13  ;;  %v276_v47 = vrot.slane %v255_v45, %v942_v14  ;;  %v286_v53 = vrot.slane %v255_v45, %v953_v19  ;;  %v266_v57 = vrot.slane %v255_v45, %v948_v16  ;;  %s845_s30 = smov 111  }
   0xa   :  { %v329_v60 = vrot.slane %v255_v45, %v1000_v50  ;;  %v310_v1 = vrot.slane %v255_v45, %v1006_v54  ;;  %vm473_vm13 = vcmask 48128   ;;  %vm506_vm14 = vcmask 1031168  }
   0xb   :  { %vm543_vm15 = vcmask 965632   ;;  %vm563_vm1 = vcmask 916480  }
  0x83   :  { %v47_v5 = vpop.permute.xlu0 %46 }
  0xd6   :  { %v123_v7 = vpop.f32.mrb[0].mxu0 }
  0xd7   :  { %v124_v8 = vadd.f32 %v123_v7, %v47_v5  ;;  %v745_v9 = vpop.f32.mrb[1].mxu0 }
  0xd9   :  { %156 = vrot.lane.b32.xlu1 %v124_v8, %s831_s0  ;;  %136 = vrot.lane.b32.xlu0 %v124_v8, %s832_s1  ;;  %v134_v32 = vmul.f32 %v133_v22, %v124_v8  ;;  %v320_v22 = vrot.slane %v255_v45, %v1017_v2 }
  0xdd   :  { %146 = vrot.lane.b32.xlu1 %v124_v8, %s833_s28  ;;  %176 = vperm.xlu0 %825, %v128_v10  }
 0x14b   :  { %v157_v20 = vpop.permute.xlu1 %156  ;;  %v137_v21 = vpop.permute.xlu0 %136 }
 0x14c   :  { %v160_v23 = vsel %vm159_vm3, %v157_v20, 0.0  ;;  %v140_v24 = vsel %vm139_vm4, %v137_v21, 0.0 }
 0x14d   :  { %v165_v25 = vmul.f32 %v164_v17, %v160_v23  ;;  %v145_v26 = vmul.f32 %v144_v18, %v140_v24  ;;  %v301_v18 = vrot.slane %v255_v45, %v1011_v61 }
 0x14f   :  { %v167_v28 = vrot.slane %v145_v26, 4  ;;  %v147_v29 = vpop.permute.xlu1 %146  ;;  %v170_v31 = vrot.slane %v165_v25, 4 }
 0x150   :  { %v150_v30 = vsel %vm149_vm5, %v147_v29, 0.0 }
 0x151   :  { %v155_v33 = vmul.f32 %v154_v27, %v150_v30  ;;  %v172_v34 = vsel %vm53_vm0, %v134_v32, %v167_v28 }
 0x153   :  { %v173_v35 = vsel %vm53_vm0, %v155_v33, %v170_v31  ;;  %v717_v33 = vld [vmem:[%s1125_s8 + $0x8] ss:$0 sm:$0xff]  ;;  %s839_s8 = smov 6  }
 0x154   :  { %v786_v36 = vpack.c.bf16 %v173_v35, %v172_v34 }
 0x156   :  { %787 = vmatpush3.bf16.msra.mxu0 %v786_v36  ;;  %v253_v36 = vld [vmem:[%s1126_s6] sm:$0xf]  ;;  %s840_s6 = smov 126  }
 0x157   :  { %788 = vmatprep.subr.bf16.mxu0 %v830_v6 }
 0x159   :  { %751 = vmatmul.mubr.msk.f32.vlgmr.msra.gmra.mrb[2].mxu0 %vm179_vm6, %v127_v37 }
 0x15a   :  { %763 = vmatprep.mubr.msk.f32.mxu0 %vm828_vm2, %v827_v0  ;;  %vm553_vm2 = vcmask 924672  }
 0x15c   :  { %v177_v38 = vpop.permute.xlu0 %176 }
 0x22c   :  { %v249_v39 = vpop.f32.mrb[2].mxu0 }
 0x22d   :  { %v968_v40 = vadd.f32 %v249_v39, %v177_v38  ;;  %v752_v41 = vpop.f32.mrb[3].mxu0 }
 0x22e   :  { %v440_v41 = vld [vmem:[%s1128_s11] sm:$0xff] }
 0x22f   :  { %288 = vrot.lane.b32.xlu0 %v968_v40, %s834_s13  ;;  %268 = vrot.lane.b32.xlu1 %v968_v40, %s835_s14  ;;  %v701_v42 = vrot.slane %v968_v40, 4  ;;  %v302_v27 = vmul.f32 %v301_v18, %v968_v40  ;;  %v501_v18 = vrot.slane %v440_v41, %v1017_v2 }
 0x231   :  { %v706_v43 = vsel %vm53_vm0, %v124_v8, %v701_v42  ;;  %v478_v42 = vrot.slane %v440_v41, %v939_v13 }
 0x232   :  { %708 = vst [vmem:[%s1123_s12] sm:$0xff] %v706_v43  ;;  %v459_v43 = vrot.slane %v440_v41, %v942_v14 }
 0x233   :  { %278 = vrot.lane.b32.xlu0 %v968_v40, %s836_s16  ;;  %258 = vrot.lane.b32.xlu1 %v968_v40, %s837_s17 }
 0x237   :  { %322 = vrot.lane.b32.xlu0 %v968_v40, %s833_s28  ;;  %303 = vrot.lane.b32.xlu1 %v968_v40, %s832_s1 }
 0x23b   :  { %331 = vrot.lane.b32.xlu0 %v968_v40, %s831_s0  ;;  %312 = vrot.lane.b32.xlu1 %v968_v40, %s838_s18 }
 0x23f   :  { %358 = vperm.xlu1 %826, %v254_v44  }
 0x2a1   :  { %v289_v48 = vpop.permute.xlu0 %288  ;;  %v269_v49 = vpop.permute.xlu1 %268 }
 0x2a2   :  { %v292_v51 = vsel %vm291_vm7, 0.0, %v289_v48  ;;  %v272_v52 = vsel %vm271_vm8, 0.0, %v269_v49 }
 0x2a3   :  { %v297_v55 = vmul.f32 %v296_v46, %v292_v51  ;;  %v277_v56 = vmul.f32 %v276_v47, %v272_v52  ;;  %v468_v51 = vrot.slane %v440_v41, %v953_v19  ;;  %v450_v52 = vrot.slane %v440_v41, %v948_v16 }
 0x2a5   :  { %v279_v58 = vpop.permute.xlu0 %278  ;;  %v259_v59 = vpop.permute.xlu1 %258  ;;  %v344_v3 = vrot.slane %v297_v55, 4  ;;  %v341_v4 = vrot.slane %v277_v56, 4  ;;  %v492_v56 = vrot.slane %v440_v41, %v1006_v54 }
 0x2a6   :  { %v282_v62 = vsel %vm281_vm9, 0.0, %v279_v58  ;;  %v262_v63 = vsel %vm261_vm10, 0.0, %v259_v59  ;;  %v511_v59 = vrot.slane %v440_v41, %v1000_v50 }
 0x2a7   :  { %v287_v5 = vmul.f32 %v286_v53, %v282_v62  ;;  %v267_v7 = vmul.f32 %v266_v57, %v262_v63 }
 0x2a9   :  { %v353_v8 = vsel %vm53_vm0, %v287_v5, %v344_v3  ;;  %v352_v9 = vsel %vm53_vm0, %v267_v7, %v341_v4  ;;  %v323_v10 = vpop.permute.xlu0 %322  ;;  %v304_v11 = vpop.permute.xlu1 %303  ;;  %v487_v3 = vrot.slane %v440_v41, %v1011_v61 }
 0x2aa   :  { %v789_v15 = vpack.c.bf16 %v353_v8, %v352_v9  ;;  %v325_v17 = vsel %vm149_vm5, %v323_v10, 0.0  ;;  %v306_v20 = vsel %vm139_vm4, %v304_v11, 0.0 }
 0x2ab   :  { %v330_v21 = vmul.f32 %v329_v60, %v325_v17  ;;  %v311_v12 = vmul.f32 %v310_v1, %v306_v20  ;;  %v441_v17 = vld [vmem:[%s1128_s11 + $0x8] sm:$0xff] }
 0x2ac   :  { %790 = vmatpush3.bf16.msra.mxu0 %v789_v15 }
 0x2ad   :  { %v347_v23 = vrot.slane %v311_v12, 4  ;;  %v313_v24 = vpop.permute.xlu1 %312  ;;  %791 = vmatprep.subr.bf16.mxu0 %v830_v6  ;;  %v350_v26 = vrot.slane %v330_v21, 4  ;;  %v332_v29 = vpop.permute.xlu0 %331 }
 0x2ae   :  { %v316_v25 = vsel %vm315_vm11, %v313_v24, 0.0  ;;  %v334_v34 = vsel %vm159_vm3, %v332_v29, 0.0 }
 0x2af   :  { %v321_v28 = vmul.f32 %v320_v22, %v316_v25  ;;  %v354_v30 = vsel %vm53_vm0, %v302_v27, %v347_v23  ;;  %v339_v35 = vmul.f32 %v717_v33, %v334_v34  ;;  %v529_v23 = vrot.slane %v441_v17, %v942_v14 }
 0x2b0   :  { %v548_v27 = vrot.slane %v441_v17, %v939_v13 }
 0x2b1   :  { %v355_v31 = vsel %vm53_vm0, %v321_v28, %v350_v26 }
 0x2b2   :  { %v792_v32 = vpack.c.bf16 %v355_v31, %v354_v30  ;;  %v520_v30 = vrot.slane %v441_v17, %v948_v16  ;;  %v568_v16 = vrot.slane %v441_v17, %v1006_v54 }
 0x2b4   :  { %793 = vmatpush3.bf16.msra.mxu0 %v792_v32 }
 0x2b5   :  { %761 = vmatprep.subr.mxu0 %v827_v0  ;;  %v439_v0 = vld [vmem:[%s1127_s10] sm:$0xf] }
 0x2b8   :  { %762 = vmatpush3.msk.msra.mxu0 %vm53_vm0, %v339_v35 }
 0x2b9   :  { %764 = vmatmul.mubr.msk.f32.vlgmr.msra.gmra.mrb[4].mxu0 %vm361_vm12, %v253_v36 }
 0x2be   :  { %v359_v37 = vpop.permute.xlu1 %358 }
 0x38c   :  { %v434_v38 = vpop.f32.mrb[4].mxu0 }
 0x38d   :  { %v1039_v39 = vadd.f32 %v434_v38, %v359_v37  ;;  %v765_v40 = vpop.f32.mrb[5].mxu0 }
 0x38e   :  { %v538_v40 = vrot.slane %v441_v17, %v953_v19  ;;  %v558_v19 = vrot.slane %v441_v17, %v1011_v61 }
 0x38f   :  { %470 = vrot.lane.b32.xlu1 %v1039_v39, %s839_s8  ;;  %452 = vrot.lane.b32.xlu0 %v1039_v39, %s835_s14  ;;  %v493_v20 = vmul.f32 %v492_v56, %v1039_v39 }
 0x391   :  { %v597_v28 = vrot.slane %v493_v20, 4 }
 0x393   :  { %461 = vrot.lane.b32.xlu1 %v1039_v39, %s836_s16  ;;  %443 = vrot.lane.b32.xlu0 %v1039_v39, %s837_s17 }
 0x397   :  { %480 = vrot.lane.b32.xlu1 %v1039_v39, %s834_s13  ;;  %503 = vrot.lane.b32.xlu0 %v1039_v39, %s840_s6 }
 0x39b   :  { %522 = vrot.lane.b32.xlu1 %v1039_v39, %s833_s28  ;;  %494 = vrot.lane.b32.xlu0 %v1039_v39, %s832_s1 }
 0x39f   :  { %513 = vrot.lane.b32.xlu1 %v1039_v39, %s838_s18  ;;  %540 = vrot.lane.b32.xlu0 %v1039_v39, %s841_s26 }
 0x3a3   :  { %560 = vrot.lane.b32.xlu1 %v1039_v39, %s842_s2  ;;  %531 = vrot.lane.b32.xlu0 %v1039_v39, %s831_s0 }
 0x3a7   :  { %550 = vrot.lane.b32.xlu1 %v1039_v39, %s843_s27  ;;  %580 = vrot.lane.b32.xlu0 %v1039_v39, %s844_s29 }
 0x3ab   :  { %624 = vperm.xlu1 %826, %v439_v0   ;;  %570 = vrot.lane.b32.xlu0 %v1039_v39, %s845_s30 }
 0x401   :  { %v471_v44 = vpop.permute.xlu1 %470  ;;  %v453_v45 = vpop.permute.xlu0 %452 }
 0x402   :  { %v474_v46 = vsel %vm473_vm13, 0.0, %v471_v44  ;;  %v455_v47 = vsel %vm271_vm8, 0.0, %v453_v45 }
 0x403   :  { %v479_v48 = vmul.f32 %v478_v42, %v474_v46  ;;  %v460_v49 = vmul.f32 %v459_v43, %v455_v47  ;;  %v588_v46 = vrot.slane %v441_v17, %v1000_v50 }
 0x405   :  { %v462_v53 = vpop.permute.xlu1 %461  ;;  %v444_v55 = vpop.permute.xlu0 %443  ;;  %v594_v60 = vrot.slane %v479_v48, 4  ;;  %v591_v62 = vrot.slane %v460_v49, 4 }
 0x406   :  { %v464_v57 = vsel %vm281_vm9, 0.0, %v462_v53  ;;  %v446_v58 = vsel %vm261_vm10, 0.0, %v444_v55 }
 0x407   :  { %v469_v63 = vmul.f32 %v468_v51, %v464_v57  ;;  %v451_v1 = vmul.f32 %v450_v52, %v446_v58  ;;  %v578_v58 = vrot.slane %v441_v17, %v1017_v2 }
 0x409   :  { %v481_v4 = vpop.permute.xlu1 %480  ;;  %v504_v5 = vpop.permute.xlu0 %503  ;;  %v614_v7 = vsel %vm53_vm0, %v451_v1, %v591_v62  ;;  %v615_v8 = vsel %vm53_vm0, %v469_v63, %v594_v60 }
 0x40a   :  { %v483_v9 = vsel %vm291_vm7, 0.0, %v481_v4  ;;  %v507_v10 = vsel %vm506_vm14, %v504_v5, 0.0  ;;  %v795_v11 = vpack.c.bf16 %v615_v8, %v614_v7  ;;  %v438_v5 = vld [vmem:[%s1129_s9] sm:$0xf] }
 0x40b   :  { %v512_v15 = vmul.f32 %v511_v59, %v507_v10  ;;  %v488_v21 = vmul.f32 %v487_v3, %v483_v9 }
 0x40c   :  { %796 = vmatpush3.bf16.msra.mxu1 %v795_v11 }
 0x40d   :  { %v523_v12 = vpop.permute.xlu1 %522  ;;  %v495_v22 = vpop.permute.xlu0 %494  ;;  %797 = vmatprep.subr.bf16.mxu1 %v830_v6  ;;  %v600_v25 = vrot.slane %v512_v15, 4  ;;  %v616_v33 = vsel %vm53_vm0, %v488_v21, %v597_v28 }
 0x40e   :  { %v497_v24 = vsel %vm139_vm4, %v495_v22, 0.0  ;;  %v525_v29 = vsel %vm149_vm5, %v523_v12, 0.0  ;;  %vm583_vm4 = vcmask 900096   ;;  %vm627_vm5 = vcmask 523264  }
 0x40f   :  { %v502_v26 = vmul.f32 %v501_v18, %v497_v24  ;;  %v530_v37 = vmul.f32 %v529_v23, %v525_v29 }
 0x411   :  { %v514_v31 = vpop.permute.xlu1 %513  ;;  %v541_v32 = vpop.permute.xlu0 %540  ;;  %v617_v34 = vsel %vm53_vm0, %v502_v26, %v600_v25  ;;  %v603_v43 = vrot.slane %v530_v37, 4 }
 0x412   :  { %v516_v14 = vsel %vm315_vm11, %v514_v31, 0.0  ;;  %v544_v35 = vsel %vm543_vm15, %v541_v32, 0.0  ;;  %v798_v36 = vpack.c.bf16 %v617_v34, %v616_v33 }
 0x413   :  { %v549_v38 = vmul.f32 %v548_v27, %v544_v35  ;;  %v521_v13 = vmul.f32 %v520_v30, %v516_v14 }
 0x414   :  { %799 = vmatpush3.bf16.msra.mxu1 %v798_v36 }
 0x415   :  { %v561_v0 = vpop.permute.xlu1 %560  ;;  %v532_v41 = vpop.permute.xlu0 %531  ;;  %800 = vmatprep.subr.bf16.mxu1 %v830_v6  ;;  %v606_v44 = vrot.slane %v549_v38, 4  ;;  %v618_v51 = vsel %vm53_vm0, %v521_v13, %v603_v43 }
 0x416   :  { %v534_v42 = vsel %vm159_vm3, %v532_v41, 0.0  ;;  %v564_v47 = vsel %vm563_vm1, %v561_v0, 0.0  ;;  %vm573_vm3 = vcmask 908288  }
 0x417   :  { %v539_v45 = vmul.f32 %v538_v40, %v534_v42  ;;  %v569_v56 = vmul.f32 %v568_v16, %v564_v47 }
 0x419   :  { %v551_v48 = vpop.permute.xlu1 %550  ;;  %v581_v49 = vpop.permute.xlu0 %580  ;;  %v619_v52 = vsel %vm53_vm0, %v539_v45, %v606_v44  ;;  %v609_v60 = vrot.slane %v569_v56, 4 }
 0x41a   :  { %v554_v53 = vsel %vm553_vm2, %v551_v48, 0.0  ;;  %v584_v54 = vsel %vm583_vm4, %v581_v49, 0.0  ;;  %v801_v55 = vpack.c.bf16 %v619_v52, %v618_v51 }
 0x41b   :  { %v589_v57 = vmul.f32 %v588_v46, %v584_v54  ;;  %v559_v59 = vmul.f32 %v558_v19, %v554_v53 }
 0x41c   :  { %802 = vmatpush3.bf16.msra.mxu1 %v801_v55 }
 0x41d   :  { %v571_v50 = vpop.permute.xlu0 %570  ;;  %803 = vmatprep.subr.bf16.mxu1 %v830_v6  ;;  %v612_v62 = vrot.slane %v589_v57, 4  ;;  %v620_v1 = vsel %vm53_vm0, %v559_v59, %v609_v60 }
 0x41e   :  { %v574_v61 = vsel %vm573_vm3, %v571_v50, 0.0 }
 0x41f   :  { %v579_v63 = vmul.f32 %v578_v58, %v574_v61 }
 0x421   :  { %v621_v3 = vsel %vm53_vm0, %v579_v63, %v612_v62 }
 0x422   :  { %v804_v4 = vpack.c.bf16 %v621_v3, %v620_v1 }
 0x424   :  { %805 = vmatpush3.bf16.msra.mxu1 %v804_v4 }
 0x427   :  { %783 = vmatmul.mubr.msk.f32.vlgmr.msra.gmra.mrb[0].mxu1 %vm627_vm5, %v438_v5 }
 0x42a   :  { %v625_v2 = vpop.permute.xlu1 %624 }
 0x4fa   :  { %v697_v7 = vpop.f32.mrb[0].mxu1 }
 0x4fb   :  { %v698_v8 = vadd.f32 %v697_v7, %v625_v2  ;;  %v784_v6 = vpop.f32.mrb[1].mxu1 }
 0x4fd   :  { %v704_v9 = vrot.slane %v698_v8, 4 }
 0x4ff   :  { %v707_v10 = vsel %vm53_vm0, %v1039_v39, %v704_v9 }
 0x500   :  { %709 = vst [vmem:[%s1123_s12 + $0x8] sm:$0xff] %v707_v10 }

</bundles_post_ra>
